<compile_context>
chip_gen: v7x
topology: tpu7x:2x2x1
jax: 0.10.0
libtpu: 0.0.40
codegen_flags: <defaults>
</compile_context>

<pallas_src>
import math

import jax
import jax.numpy as jnp
import numpy as np
from jax import lax
from jax.experimental import pallas as pl
from jax.experimental.pallas import tpu as pltpu


def _round_up(n, m):
    return ((n + m - 1) // m) * m


def _vmem_limit(working_set_bytes):
    # Never below the 32 MiB v6e/v7x default (raising v5e's 16 MiB default is the
    # point); stay under v7x's 64 MiB physical VMEM.
    return int(min(max(int(working_set_bytes * 1.5) + (4 << 20), 32 * 2 ** 20),
                   56 * 2 ** 20))


_UNROLL_L_MAX = 128   # fully unroll (static slices) conv loops below this length


# ---------------------------------------------------------------------------
# Pallas kernel 0: the Sin module itself   y = sin(freq * x),  freq: (1, dim)
# ---------------------------------------------------------------------------
def _sin_kernel(x_ref, freq_ref, o_ref):
    o_ref[...] = jnp.sin(freq_ref[...] * x_ref[...])


def sin_pallas(x, freq, *, row_tile=256):
    """x: (N, dim), freq: (1, dim) -> sin(freq * x), same as torch Sin.forward."""
    N, dim = x.shape
    assert freq.shape == (1, dim)
    row_tile = min(row_tile, _round_up(N, 8))
    Np = _round_up(N, row_tile)
    xp = jnp.zeros((Np, dim), x.dtype).at[:N].set(x)
    out = pl.pallas_call(
        _sin_kernel,
        grid=(Np // row_tile,),
        in_specs=[pl.BlockSpec((row_tile, dim), lambda i: (i, 0)),
                  pl.BlockSpec((1, dim), lambda i: (0, 0))],
        out_specs=pl.BlockSpec((row_tile, dim), lambda i: (i, 0)),
        out_shape=jax.ShapeDtypeStruct((Np, dim), x.dtype),
        compiler_params=pltpu.CompilerParams(dimension_semantics=("parallel",)),
    )(xp, freq)
    return out[:N]


# ---------------------------------------------------------------------------
# Pallas kernel 1: implicit filter MLP + exponential modulation, lane-dense.
#   h = Linear -> Sin -> (Linear -> Sin) * num_inner -> Linear(no bias)
#   h = h * (exp(-t * |deltas|) + shift)
# Everything is kept transposed: activations (order, T), output (d_model, T),
# so the length axis stays on lanes and no in-kernel transpose is needed.
# ---------------------------------------------------------------------------
def make_filter_kernel(num_inner_mlps, shift, order, row_tile):
    def kernel(*refs):
        zT_ref, tT_ref, w1_ref, b1_ref = refs[:4]
        rest = refs[4:]
        inner = rest[: 2 * num_inner_mlps]
        w_out_ref, freq_ref, dabs_ref, out_ref = rest[2 * num_inner_mlps:]

        # Hoist the freq broadcast once (JAX does not CSE broadcast_in_dim).
        freq = jnp.broadcast_to(freq_ref[...], (order, row_tile))

        h = jnp.dot(w1_ref[...], zT_ref[...],
                    preferred_element_type=jnp.float32) + b1_ref[...]   # (order, T)
        h = jnp.sin(freq * h)                                           # Sin
        for i in range(num_inner_mlps):
            w = inner[2 * i][...]
            b = inner[2 * i + 1][...]
            h = jnp.sin(freq * (jnp.dot(w, h,
                                        preferred_element_type=jnp.float32) + b))
        h = jnp.dot(w_out_ref[...], h,
                    preferred_element_type=jnp.float32)                 # (d_model, T)
        decay = jnp.exp(-dabs_ref[...] * tT_ref[...])                   # (d,1)*(1,T)
        out_ref[...] = (h * (decay + shift)).astype(out_ref.dtype)
    return kernel


def hyena_filter_call(z, t, params, num_inner_mlps, shift, d_model, *, row_tile=512):
    """z: (Lk, emb_dim), t: (Lk, 1) -> (d_model, Lk) channel-major, lane-dense."""
    Lk, emb_dim = z.shape
    order = params["freq"].shape[-1]
    row_tile = min(row_tile, _round_up(Lk, 128))
    Lk_pad = _round_up(Lk, row_tile)

    # Transposed, padded inputs (length on the lane axis).
    zT = jnp.zeros((emb_dim, Lk_pad), jnp.float32).at[:, :Lk].set(z.T)
    tT = jnp.zeros((1, Lk_pad), jnp.float32).at[:, :Lk].set(t.reshape(1, Lk))
    w1T = params["w1"].T                                   # (order, emb_dim)
    b1T = params["b1"].reshape(order, 1)
    inner = []
    for i in range(num_inner_mlps):
        inner += [params[f"w_in_{i}"].T, params[f"b_in_{i}"].reshape(order, 1)]
    w_outT = params["w_out"].T                             # (d_model, order)
    freqT = params["freq"].reshape(order, 1)
    dabsT = params["deltas_abs"].reshape(d_model, 1)

    inputs = [zT, tT, w1T, b1T, *inner, w_outT, freqT, dabsT]
    in_specs = [
        pl.BlockSpec((emb_dim, row_tile), lambda i: (0, i)),
        pl.BlockSpec((1, row_tile), lambda i: (0, i)),
    ]
    # Small weights are replicated across the row-tile grid (resident in VMEM).
    in_specs += [pl.BlockSpec(a.shape, (lambda i, n=a.ndim: (0,) * n))
                 for a in inputs[2:]]

    weight_bytes = 4 * sum(int(a.size) for a in inputs[2:])
    cost = pl.CostEstimate(
        flops=Lk_pad * 2 * order * (emb_dim + num_inner_mlps * order + d_model),
        transcendentals=Lk_pad * ((1 + num_inner_mlps) * order + d_model),
        bytes_accessed=4 * Lk_pad * (emb_dim + 1 + d_model) + weight_bytes,
    )

    out = pl.pallas_call(
        make_filter_kernel(num_inner_mlps, shift, order, row_tile),
        grid=(Lk_pad // row_tile,),
        in_specs=in_specs,
        out_specs=pl.BlockSpec((d_model, row_tile), lambda i: (0, i)),
        out_shape=jax.ShapeDtypeStruct((d_model, Lk_pad), jnp.float32),
        compiler_params=pltpu.CompilerParams(dimension_semantics=("parallel",)),
        cost_estimate=cost,
    )(*inputs)
    return out[:, :Lk]


# ---------------------------------------------------------------------------
# Pallas kernel 2a: fftconv for small batch -> VPU shift-and-accumulate direct
# convolution (MXU would be ~B/256 utilized at M=B), no Toeplitz at all.
# ---------------------------------------------------------------------------
def _make_fftconv_vpu_kernel(L, G, unrolled):
    def kernel(u_ref, k_ref, o_ref):
        # u_ref: (B, G, L), k_ref: (G, Kpad), o_ref: (B, G, L)
        if unrolled:                       # small L: fully static slices
            u = u_ref[...]
            kk = k_ref[...]
            acc = jnp.zeros(o_ref.shape, jnp.float32)
            for j in range(L):
                acc = acc + u[:, :, j:j + 1] * kk[None, :, L - 1 - j: 2 * L - 1 - j]
            o_ref[...] = acc.astype(o_ref.dtype)
        else:                              # large L: bounded code size
            o_ref[...] = jnp.zeros_like(o_ref)

            def body(j, _):
                kwin = k_ref[:, pl.ds(L - 1 - j, L)]        # (G, L)
                uj = u_ref[:, :, pl.ds(j, 1)]               # (B, G, 1)
                o_ref[...] += (uj * kwin[None, :, :]).astype(o_ref.dtype)
                return 0

            lax.fori_loop(0, L, body, 0, unroll=8)
    return kernel


# ---------------------------------------------------------------------------
# Pallas kernel 2b: fftconv for large batch -> per-channel-group Toeplitz matmul
# on the MXU.  Toeplitz built in a column-tiled VMEM scratch; output is emitted
# channel-major (no in-kernel output relayout).
# ---------------------------------------------------------------------------
def _make_fftconv_mxu_kernel(L, Lt, G, n_col, mxu_dtype, unrolled):
    def kernel(u_ref, k_ref, o_ref, toep_ref):
        # u_ref: (B, G, L), k_ref: (G, Kpad), o_ref: (G, B, Lt), toep: (G, L, Lt)
        if unrolled:                       # small L, single column tile: static build
            kk = k_ref[...].astype(mxu_dtype)
            for j in range(L):
                toep_ref[:, j, :] = kk[:, L - 1 - j: L - 1 - j + Lt]
        else:
            if n_col > 1:
                i0 = pl.multiple_of(pl.program_id(1) * Lt, Lt)
            else:
                i0 = 0
            base = L - 1 + i0
            # TODO(synk): replace with a strided pltpu.roll build (one rotate per
            # 8-sublane chunk) once the rotate direction is validated on HW.

            def build(j, _):
                kwin = k_ref[:, pl.ds(base - j, Lt)]        # (G, Lt)
                toep_ref[:, pl.ds(j, 1), :] = kwin[:, None, :].astype(toep_ref.dtype)
                return 0

            lax.fori_loop(0, L, build, 0, unroll=8)

        # TODO(synk): drop this transpose via non-leading batch dims in dot_general;
        # kept because the leading-batch form is the known-good Mosaic lowering.
        ug = jnp.transpose(u_ref[...], (1, 0, 2)).astype(mxu_dtype)    # (G, B, L)
        o_ref[...] = lax.dot_general(
            ug, toep_ref[...],
            dimension_numbers=(((2,), (1,)), ((0,), (0,))),
            preferred_element_type=jnp.float32).astype(o_ref.dtype)    # (G, B, Lt)
    return kernel


def fftconv_pallas(x, k, bias, *, group=8, col_tile=512, mxu_min_batch=8,
                   mxu_dtype=jnp.float32, force_path=None):
    """x: (B, C, L) f32, k: (C, 2L-1), bias: (C,) -> (B, C, L). Matches fftconv()."""
    B, C, L = x.shape
    assert k.shape == (C, 2 * L - 1), (k.shape, (C, 2 * L - 1))
    G = min(group, C)
    assert C % G == 0, "channel count must be divisible by the group size"

    # Fold the u*bias residual into the Toeplitz diagonal: y = u (*) k + u*bias.
    k = k.astype(jnp.float32).at[:, L - 1].add(bias.astype(jnp.float32))
    # Lane-dense filter block: pad 2L-1 up to a multiple of 128.
    Kpad = _round_up(2 * L - 1, 128)
    kp = jnp.zeros((C, Kpad), jnp.float32).at[:, : 2 * L - 1].set(k)

    path = force_path or ("mxu" if B >= mxu_min_batch else "vpu")
    cost = pl.CostEstimate(flops=2 * B * C * L * L, transcendentals=0,
                           bytes_accessed=(2 * B * C * L + C * Kpad) * 4)

    if path == "vpu":
        est = 4 * (4 * B * G * L + 2 * G * Kpad)
        return pl.pallas_call(
            _make_fftconv_vpu_kernel(L, G, unrolled=(L <= _UNROLL_L_MAX)),
            grid=(C // G,),
            in_specs=[pl.BlockSpec((B, G, L), lambda c: (0, c, 0)),
                      pl.BlockSpec((G, Kpad), lambda c: (c, 0))],
            out_specs=pl.BlockSpec((B, G, L), lambda c: (0, c, 0)),
            out_shape=jax.ShapeDtypeStruct((B, C, L), x.dtype),
            compiler_params=pltpu.CompilerParams(
                dimension_semantics=("parallel",),
                vmem_limit_bytes=_vmem_limit(est)),
            cost_estimate=cost,
        )(x, kp)

    # ---- MXU Toeplitz path ----
    elem = np.dtype(mxu_dtype).itemsize
    if L <= col_tile:
        Lt = L
    else:
        Lt = col_tile
        while L % Lt != 0 and Lt > 128:
            Lt //= 2
        if L % Lt != 0:
            Lt = L                      # TODO(synk): ragged column tiling
    while (G * L * Lt * elem > 24 * 2 ** 20 and Lt % 2 == 0 and Lt > 128
           and L % (Lt // 2) == 0):
        Lt //= 2
    n_col = L // Lt
    unrolled = (n_col == 1 and L <= _UNROLL_L_MAX)

    if n_col == 1:
        grid = (C // G,)
        u_map = lambda c: (0, c, 0)
        k_map = lambda c: (c, 0)
        o_map = lambda c: (c, 0, 0)
        sem = ("parallel",)
    else:
        grid = (C // G, n_col)          # col innermost: u/k blocks stay resident
        u_map = lambda c, t: (0, c, 0)
        k_map = lambda c, t: (c, 0)
        o_map = lambda c, t: (c, 0, t)
        sem = ("parallel", "arbitrary")

    est = (2 * B * G * L * 4 + 2 * G * Kpad * 4 + 2 * G * B * Lt * 4
           + G * L * Lt * elem)
    y_cm = pl.pallas_call(
        _make_fftconv_mxu_kernel(L, Lt, G, n_col, mxu_dtype, unrolled),
        grid=grid,
        in_specs=[pl.BlockSpec((B, G, L), u_map),       # x stays in (B, C, L)
                  pl.BlockSpec((G, Kpad), k_map)],      # kernel rows only
        out_specs=pl.BlockSpec((G, B, Lt), o_map),
        out_shape=jax.ShapeDtypeStruct((C, B, L), x.dtype),
        scratch_shapes=[pltpu.VMEM((G, L, Lt), mxu_dtype)],
        compiler_params=pltpu.CompilerParams(
            dimension_semantics=sem, vmem_limit_bytes=_vmem_limit(est)),
        cost_estimate=cost,
    )(x, kp)
    # Channel-major out of the kernel; the one layout restore runs in XLA here.
    return jnp.transpose(y_cm, (1, 0, 2))


# ---------------------------------------------------------------------------
# HyenaFilter module (deterministic synthetic parameters)
# ---------------------------------------------------------------------------
class HyenaFilterPallas:
    def __init__(self, d_model, emb_dim=3, order=16, seq_len=64, w=1,
                 num_inner_mlps=2, fast_decay_pct=0.3, slow_decay_pct=1.5,
                 target=0.01, shift=0.0, channel_group=8, mxu_dtype=jnp.float32,
                 key=None):
        assert emb_dim % 2 != 0 and emb_dim >= 3
        self.d_model = d_model
        self.num_inner_mlps = num_inner_mlps
        self.shift = shift
        self.channel_group = channel_group
        self.seq_len = seq_len
        self.mxu_dtype = mxu_dtype

        keys = jax.random.split(key, 3 + num_inner_mlps)
        ki = iter(keys)
        # nn.Parameter(torch.randn(d_model))
        self.bias = jax.random.normal(next(ki), (d_model,), jnp.float32)

        def linear_init(k_, fan_in, fan_out, with_bias=True):
            kw, kb = jax.random.split(k_)
            bound = 1.0 / math.sqrt(fan_in)
            w_ = jax.random.uniform(kw, (fan_in, fan_out), jnp.float32, -bound, bound)
            b_ = (jax.random.uniform(kb, (1, fan_out), jnp.float32, -bound, bound)
                  if with_bias else None)
            return w_, b_

        p = {}
        p["w1"], p["b1"] = linear_init(next(ki), emb_dim, order)
        for i in range(num_inner_mlps):
            p[f"w_in_{i}"], p[f"b_in_{i}"] = linear_init(next(ki), order, order)
        p["w_out"], _ = linear_init(next(ki), order, d_model, with_bias=False)
        p["freq"] = float(w) * jnp.ones((1, order), jnp.float32)       # Sin freq
        max_decay = math.log(target) / fast_decay_pct
        min_decay = math.log(target) / slow_decay_pct
        deltas = jnp.linspace(min_decay, max_decay, d_model).reshape(1, d_model)
        p["deltas_abs"] = jnp.abs(deltas)
        self.params = p

        # PositionalEmbedding buffers z, t
        t = jnp.linspace(0.0, 1.0, seq_len).reshape(seq_len, 1)
        bands = (emb_dim - 1) // 2
        t_rescaled = jnp.linspace(0.0, seq_len - 1, seq_len).reshape(seq_len, 1)
        w_ang = 2.0 * math.pi * t_rescaled / seq_len
        f = jnp.linspace(1e-4, bands - 1, bands).reshape(1, bands)
        z_c = jnp.exp(-1j * f * w_ang)
        self.z = jnp.concatenate([t, z_c.real, z_c.imag], axis=-1)     # (seq_len, emb)
        self.t = t                                                     # (seq_len, 1)

    def filter(self, Lk):
        """Returns the implicit filter channel-major: (d_model, Lk)."""
        assert Lk <= self.seq_len, (
            f"positional-embedding buffers were built for seq_len={self.seq_len}; "
            f"requested filter length {Lk} — construct the module with a larger "
            f"seq_len for this L")
        return hyena_filter_call(self.z[:Lk], self.t[:Lk], self.params,
                                 self.num_inner_mlps, self.shift, self.d_model)

    def forward(self, x, L, k=None, bias=None):
        if k is None:
            # TODO(synk): upstream's k=None branch feeds (1, 2L-1, d) straight into
            # fftconv (rfft over d); we follow HyenaOperator's convention k->(d,2L-1).
            k = self.filter(2 * L - 1)                                 # (d, 2L-1)
        k = k[0] if isinstance(k, tuple) else k
        if bias is None:
            bias = self.bias
        return fftconv_pallas(x, k, bias, group=self.channel_group,
                              mxu_dtype=self.mxu_dtype)


# ---------------------------------------------------------------------------
# Pure-JAX references (FFT-based, mirroring the torch code) for validation
# ---------------------------------------------------------------------------
def filter_ref(mod, Lk):
    z, t, p = mod.z[:Lk], mod.t[:Lk], mod.params
    h = jnp.sin(p["freq"] * (z @ p["w1"] + p["b1"]))
    for i in range(mod.num_inner_mlps):
        h = jnp.sin(p["freq"] * (h @ p[f"w_in_{i}"] + p[f"b_in_{i}"]))
    h = h @ p["w_out"]
    decay = jnp.exp(-t * p["deltas_abs"])
    return h * (decay + mod.shift)                                     # (Lk, d)


def fftconv_ref(u, k, D):
    L = u.shape[-1]
    fft_size = 2 * L
    k_f = jnp.fft.rfft(k, n=fft_size) / fft_size
    u_f = jnp.fft.rfft(u, n=fft_size)
    y = jnp.fft.irfft(u_f * k_f, n=fft_size, norm="forward")[..., L - 1:2 * L - 1]
    return y + u * D[..., None]


if __name__ == "__main__":
    key = jax.random.PRNGKey(0)
    k_mod, k_x, k_sin = jax.random.split(key, 3)

    B, d_model, L = 2, 16, 16          # C=16, grouped 8 channels per grid step
    mod = HyenaFilterPallas(d_model=d_model, emb_dim=3, order=16, seq_len=64,
                            w=1, num_inner_mlps=2, channel_group=8, key=k_mod)
    x = jax.random.normal(k_x, (B, d_model, L), jnp.float32)

    # Full forward: Pallas filter + Pallas direct-conv (VPU path, since B=2 < 8).
    y = jax.block_until_ready(mod.forward(x, L))

    # --- validation against the torch-equivalent references (plain JAX) ---
    # 1) the Sin module itself
    x_sin = jax.random.normal(k_sin, (12, 16), jnp.float32)
    y_sin = jax.block_until_ready(sin_pallas(x_sin, mod.params["freq"]))
    np.testing.assert_allclose(np.asarray(y_sin),
                               np.asarray(jnp.sin(mod.params["freq"] * x_sin)),
                               rtol=1e-5, atol=1e-5)

    # 2) implicit filter (lane-dense (d, Lk) Pallas output vs. (Lk, d) reference)
    k_filter_ref = filter_ref(mod, 2 * L - 1)                          # (2L-1, d)
    k_filter_pallas = jax.block_until_ready(mod.filter(2 * L - 1))     # (d, 2L-1)
    np.testing.assert_allclose(np.asarray(k_filter_pallas),
                               np.asarray(k_filter_ref.T),
                               rtol=2e-4, atol=2e-4)

    # 3) fftconv, VPU path (default for B=2)
    y_ref = fftconv_ref(x, k_filter_ref.T, mod.bias)
    np.testing.assert_allclose(np.asarray(y), np.asarray(y_ref),
                               rtol=2e-4, atol=2e-4)

    # 4) fftconv, MXU Toeplitz path (used when B >= mxu_min_batch) — forced here.
    y_mxu = jax.block_until_ready(
        fftconv_pallas(x, k_filter_pallas, mod.bias, group=8, force_path="mxu"))
    np.testing.assert_allclose(np.asarray(y_mxu), np.asarray(y_ref),
                               rtol=2e-4, atol=2e-4)

    assert y.shape == (B, d_model, L) and y.dtype == jnp.float32
    print("KERNEL_OK")
</pallas_src>

<mosaic_0001>
module attributes {stable_mosaic.version = 11 : i64} {
  func.func @kernel(%arg0: i32, %arg1: memref<3x128xf32, #tpu.memory_space<vmem>>, %arg2: memref<1x128xf32, #tpu.memory_space<vmem>>, %arg3: memref<16x3xf32, #tpu.memory_space<vmem>>, %arg4: memref<16x1xf32, #tpu.memory_space<vmem>>, %arg5: memref<16x16xf32, #tpu.memory_space<vmem>>, %arg6: memref<16x1xf32, #tpu.memory_space<vmem>>, %arg7: memref<16x16xf32, #tpu.memory_space<vmem>>, %arg8: memref<16x1xf32, #tpu.memory_space<vmem>>, %arg9: memref<16x16xf32, #tpu.memory_space<vmem>>, %arg10: memref<16x1xf32, #tpu.memory_space<vmem>>, %arg11: memref<16x1xf32, #tpu.memory_space<vmem>>, %arg12: memref<16x128xf32, #tpu.memory_space<vmem>>) attributes {dimension_semantics = [#tpu.dimension_semantics<parallel>], iteration_bounds = array<i64: 1>, scalar_prefetch = 0 : i64, scratch_operands = 0 : i64, tpu.core_type = #tpu.core_type<tc>, window_params = [{transform_indices = @transform_0, window_bounds = array<i64: 3, 128>}, {transform_indices = @transform_1, window_bounds = array<i64: 1, 128>}, {pipeline_mode = #tpu.pipeline_mode<synchronous>, transform_indices = @transform_2, window_bounds = array<i64: 16, 3>}, {pipeline_mode = #tpu.pipeline_mode<synchronous>, transform_indices = @transform_3, window_bounds = array<i64: 16, 1>}, {pipeline_mode = #tpu.pipeline_mode<synchronous>, transform_indices = @transform_4, window_bounds = array<i64: 16, 16>}, {pipeline_mode = #tpu.pipeline_mode<synchronous>, transform_indices = @transform_5, window_bounds = array<i64: 16, 1>}, {pipeline_mode = #tpu.pipeline_mode<synchronous>, transform_indices = @transform_6, window_bounds = array<i64: 16, 16>}, {pipeline_mode = #tpu.pipeline_mode<synchronous>, transform_indices = @transform_7, window_bounds = array<i64: 16, 1>}, {pipeline_mode = #tpu.pipeline_mode<synchronous>, transform_indices = @transform_8, window_bounds = array<i64: 16, 16>}, {pipeline_mode = #tpu.pipeline_mode<synchronous>, transform_indices = @transform_9, window_bounds = array<i64: 16, 1>}, {pipeline_mode = #tpu.pipeline_mode<synchronous>, transform_indices = @transform_10, window_bounds = array<i64: 16, 1>}, {transform_indices = @transform_11, window_bounds = array<i64: 16, 128>}]} {
    %c0 = arith.constant 0 : index
    %c0_0 = arith.constant 0 : index
    %0 = vector.load %arg10[%c0, %c0_0] : memref<16x1xf32, #tpu.memory_space<vmem>>, vector<16x1xf32>
    %1 = vector.shape_cast %0 : vector<16x1xf32> to vector<16x1xf32>
    %2 = vector.broadcast %1 : vector<16x1xf32> to vector<16x128xf32>
    %c0_1 = arith.constant 0 : index
    %c0_2 = arith.constant 0 : index
    %3 = vector.load %arg3[%c0_1, %c0_2] : memref<16x3xf32, #tpu.memory_space<vmem>>, vector<16x3xf32>
    %c0_3 = arith.constant 0 : index
    %c0_4 = arith.constant 0 : index
    %4 = vector.load %arg1[%c0_3, %c0_4] : memref<3x128xf32, #tpu.memory_space<vmem>>, vector<3x128xf32>
    %cst = arith.constant dense<0.000000e+00> : vector<16x128xf32>
    %5 = tpu.matmul %3, %4, %cst {dimension_numbers = #tpu.dot_dimension_numbers<[1], [0], [0], [1], [0, 0, 1, 1], [], []>} : vector<16x3xf32>, vector<3x128xf32>, vector<16x128xf32> -> vector<16x128xf32>
    %c0_5 = arith.constant 0 : index
    %c0_6 = arith.constant 0 : index
    %6 = vector.load %arg4[%c0_5, %c0_6] : memref<16x1xf32, #tpu.memory_space<vmem>>, vector<16x1xf32>
    %7 = vector.broadcast %6 : vector<16x1xf32> to vector<16x128xf32>
    %8 = arith.addf %5, %7 : vector<16x128xf32>
    %9 = arith.mulf %2, %8 : vector<16x128xf32>
    %10 = math.sin %9 : vector<16x128xf32>
    %c0_7 = arith.constant 0 : index
    %c0_8 = arith.constant 0 : index
    %11 = vector.load %arg5[%c0_7, %c0_8] : memref<16x16xf32, #tpu.memory_space<vmem>>, vector<16x16xf32>
    %c0_9 = arith.constant 0 : index
    %c0_10 = arith.constant 0 : index
    %12 = vector.load %arg6[%c0_9, %c0_10] : memref<16x1xf32, #tpu.memory_space<vmem>>, vector<16x1xf32>
    %cst_11 = arith.constant dense<0.000000e+00> : vector<16x128xf32>
    %13 = tpu.matmul %11, %10, %cst_11 {dimension_numbers = #tpu.dot_dimension_numbers<[1], [0], [0], [1], [0, 0, 1, 1], [], []>} : vector<16x16xf32>, vector<16x128xf32>, vector<16x128xf32> -> vector<16x128xf32>
    %14 = vector.broadcast %12 : vector<16x1xf32> to vector<16x128xf32>
    %15 = arith.addf %13, %14 : vector<16x128xf32>
    %16 = arith.mulf %2, %15 : vector<16x128xf32>
    %17 = math.sin %16 : vector<16x128xf32>
    %c0_12 = arith.constant 0 : index
    %c0_13 = arith.constant 0 : index
    %18 = vector.load %arg7[%c0_12, %c0_13] : memref<16x16xf32, #tpu.memory_space<vmem>>, vector<16x16xf32>
    %c0_14 = arith.constant 0 : index
    %c0_15 = arith.constant 0 : index
    %19 = vector.load %arg8[%c0_14, %c0_15] : memref<16x1xf32, #tpu.memory_space<vmem>>, vector<16x1xf32>
    %cst_16 = arith.constant dense<0.000000e+00> : vector<16x128xf32>
    %20 = tpu.matmul %18, %17, %cst_16 {dimension_numbers = #tpu.dot_dimension_numbers<[1], [0], [0], [1], [0, 0, 1, 1], [], []>} : vector<16x16xf32>, vector<16x128xf32>, vector<16x128xf32> -> vector<16x128xf32>
    %21 = vector.broadcast %19 : vector<16x1xf32> to vector<16x128xf32>
    %22 = arith.addf %20, %21 : vector<16x128xf32>
    %23 = arith.mulf %2, %22 : vector<16x128xf32>
    %24 = math.sin %23 : vector<16x128xf32>
    %c0_17 = arith.constant 0 : index
    %c0_18 = arith.constant 0 : index
    %25 = vector.load %arg9[%c0_17, %c0_18] : memref<16x16xf32, #tpu.memory_space<vmem>>, vector<16x16xf32>
    %cst_19 = arith.constant dense<0.000000e+00> : vector<16x128xf32>
    %26 = tpu.matmul %25, %24, %cst_19 {dimension_numbers = #tpu.dot_dimension_numbers<[1], [0], [0], [1], [0, 0, 1, 1], [], []>} : vector<16x16xf32>, vector<16x128xf32>, vector<16x128xf32> -> vector<16x128xf32>
    %c0_20 = arith.constant 0 : index
    %c0_21 = arith.constant 0 : index
    %27 = vector.load %arg11[%c0_20, %c0_21] : memref<16x1xf32, #tpu.memory_space<vmem>>, vector<16x1xf32>
    %cst_22 = arith.constant 0.000000e+00 : f32
    %28 = vector.broadcast %cst_22 : f32 to vector<16x1xf32>
    %29 = arith.subf %28, %27 : vector<16x1xf32>
    %c0_23 = arith.constant 0 : index
    %c0_24 = arith.constant 0 : index
    %30 = vector.load %arg2[%c0_23, %c0_24] : memref<1x128xf32, #tpu.memory_space<vmem>>, vector<1x128xf32>
    %31 = vector.broadcast %29 : vector<16x1xf32> to vector<16x128xf32>
    %32 = vector.broadcast %30 : vector<1x128xf32> to vector<16x128xf32>
    %33 = arith.mulf %31, %32 : vector<16x128xf32>
    %34 = math.exp %33 : vector<16x128xf32>
    %cst_25 = arith.constant 0.000000e+00 : f32
    %35 = vector.broadcast %cst_25 : f32 to vector<16x128xf32>
    %36 = arith.addf %34, %35 : vector<16x128xf32>
    %37 = arith.mulf %26, %36 : vector<16x128xf32>
    %c0_26 = arith.constant 0 : index
    %c0_27 = arith.constant 0 : index
    %38 = vector.load %arg12[%c0_26, %c0_27] : memref<16x128xf32, #tpu.memory_space<vmem>>, vector<16x128xf32>
    tpu.vector_store %arg12[%c0_26, %c0_27], %37 {strides = array<i32>} : memref<16x128xf32, #tpu.memory_space<vmem>>, vector<16x128xf32>,
    return
  }
  func.func @transform_0(%arg0: i32) -> (i32, i32) {
    %c0_i32 = arith.constant 0 : i32
    %c0_i32_0 = arith.constant 0 : i32
    return %c0_i32, %arg0 : i32, i32
  }
  func.func @transform_1(%arg0: i32) -> (i32, i32) {
    %c0_i32 = arith.constant 0 : i32
    %c0_i32_0 = arith.constant 0 : i32
    return %c0_i32, %arg0 : i32, i32
  }
  func.func @transform_2(%arg0: i32) -> (i32, i32) {
    %c0_i32 = arith.constant 0 : i32
    %c0_i32_0 = arith.constant 0 : i32
    %c0_i32_1 = arith.constant 0 : i32
    return %c0_i32, %c0_i32_0 : i32, i32
  }
  func.func @transform_3(%arg0: i32) -> (i32, i32) {
    %c0_i32 = arith.constant 0 : i32
    %c0_i32_0 = arith.constant 0 : i32
    %c0_i32_1 = arith.constant 0 : i32
    return %c0_i32, %c0_i32_0 : i32, i32
  }
  func.func @transform_4(%arg0: i32) -> (i32, i32) {
    %c0_i32 = arith.constant 0 : i32
    %c0_i32_0 = arith.constant 0 : i32
    %c0_i32_1 = arith.constant 0 : i32
    return %c0_i32, %c0_i32_0 : i32, i32
  }
  func.func @transform_5(%arg0: i32) -> (i32, i32) {
    %c0_i32 = arith.constant 0 : i32
    %c0_i32_0 = arith.constant 0 : i32
    %c0_i32_1 = arith.constant 0 : i32
    return %c0_i32, %c0_i32_0 : i32, i32
  }
  func.func @transform_6(%arg0: i32) -> (i32, i32) {
    %c0_i32 = arith.constant 0 : i32
    %c0_i32_0 = arith.constant 0 : i32
    %c0_i32_1 = arith.constant 0 : i32
    return %c0_i32, %c0_i32_0 : i32, i32
  }
  func.func @transform_7(%arg0: i32) -> (i32, i32) {
    %c0_i32 = arith.constant 0 : i32
    %c0_i32_0 = arith.constant 0 : i32
    %c0_i32_1 = arith.constant 0 : i32
    return %c0_i32, %c0_i32_0 : i32, i32
  }
  func.func @transform_8(%arg0: i32) -> (i32, i32) {
    %c0_i32 = arith.constant 0 : i32
    %c0_i32_0 = arith.constant 0 : i32
    %c0_i32_1 = arith.constant 0 : i32
    return %c0_i32, %c0_i32_0 : i32, i32
  }
  func.func @transform_9(%arg0: i32) -> (i32, i32) {
    %c0_i32 = arith.constant 0 : i32
    %c0_i32_0 = arith.constant 0 : i32
    %c0_i32_1 = arith.constant 0 : i32
    return %c0_i32, %c0_i32_0 : i32, i32
  }
  func.func @transform_10(%arg0: i32) -> (i32, i32) {
    %c0_i32 = arith.constant 0 : i32
    %c0_i32_0 = arith.constant 0 : i32
    %c0_i32_1 = arith.constant 0 : i32
    return %c0_i32, %c0_i32_0 : i32, i32
  }
  func.func @transform_11(%arg0: i32) -> (i32, i32) {
    %c0_i32 = arith.constant 0 : i32
    %c0_i32_0 = arith.constant 0 : i32
    return %c0_i32, %arg0 : i32, i32
  }
}

</mosaic_0001>

<bundles_post_ra>
// kernel: tpu_custom_call.1
= control target key start
LH: loop header
LB: loop body
LE: loop exit
PB: predicated region body
PF: predicated region fallthrough
CT: control target
= control target key end

     0   :  { %vm73_vm0 = vcmask 1042432   ;;  %vm66_vm1 = vcmask 23552   ;;  %v1280_v4 = vmov 0   ;;  %s1719_s0 = inlined_call_operand.vmem [shape: f32[3,128], index: 0, kind: input, shape index: {}]   ;;  %s1720_s1 = inlined_call_operand.vmem [shape: f32[1,128], index: 1, kind: input, shape index: {}]   ;;  %s1721_s2 = inlined_call_operand.vmem [shape: f32[16,3], index: 2, kind: input, shape index: {}]   ;;  %s1722_s3 = inlined_call_operand.vmem [shape: f32[16,1], index: 3, kind: input, shape index: {}]   ;;  %s1723_s4 = inlined_call_operand.vmem [shape: f32[16,16], index: 4, kind: input, shape index: {}]   ;;  %s1724_s5 = inlined_call_operand.vmem [shape: f32[16,1], index: 5, kind: input, shape index: {}]   ;;  %s1725_s6 = inlined_call_operand.vmem [shape: f32[16,16], index: 6, kind: input, shape index: {}]   ;;  %s1726_s7 = inlined_call_operand.vmem [shape: f32[16,1], index: 7, kind: input, shape index: {}]   ;;  %s1727_s8 = inlined_call_operand.vmem [shape: f32[16,16], index: 8, kind: input, shape index: {}]   ;;  %s1728_s9 = inlined_call_operand.vmem [shape: f32[16,1], index: 9, kind: input, shape index: {}]   ;;  %s1729_s10 = inlined_call_operand.vmem [shape: f32[16,1], index: 10, kind: input, shape index: {}]   ;;  %s1730_s11 = inlined_call_operand.hbm [shape: f32[16,128], index: 11, kind: output, shape index: {}]  }
   0x1   :  { %v53_v0 = vld [vmem:[%s1719_s0] sm:$0x7]  ;;  %v52_v2 = vld [vmem:[%s1721_s2 + $0x8] sm:$0xff]  ;;  %1226 = vset.pattern.permute.xlu0 %v1280_v4  ;;  %1227 = vset.pattern.permute.xlu1 %v1280_v4 }
   0x2   :  { %v51_v1 = vld [vmem:[%s1721_s2] sm:$0xff]  ;;  %1154 = vmatprep.subr.msk.mxu0 %vm73_vm0, %v53_v0  ;;  %v55_v6 = vld [vmem:[%s1722_s3 + $0x8] sm:$0xff] }
   0x3   :  { %1156 = vmatprep.mubr.msk.f32.mxu0 %vm66_vm1, %v51_v1  ;;  %v54_v3 = vld [vmem:[%s1722_s3] sm:$0xff]  ;;  %1155 = vmatpush3.msk.msra.mxu0 %vm73_vm0, %v53_v0 }
   0x4   :  { %v39_v5 = vld [vmem:[%s1728_s9] sm:$0xff]  ;;  %1157 = vmatmul.mubr.msk.f32.vlgmr.msra.gmra.mrb[0].mxu0 %vm66_vm1, %v52_v2  ;;  %58 = vperm.xlu0 %1226, %v54_v3  }
   0x5   :  { %16 = vsyncpa [#allocation3], 0  ;;  %43 = vperm.xlu1 %1227, %v39_v5   ;;  %v40_v7 = vld [vmem:[%s1728_s9 + $0x8] sm:$0xff]  ;;  %v364_v8 = vld [vmem:[%s1724_s5] sm:$0xff]  ;;  %vm376_vm2 = vcmask 130048   ;;  %s1287_s2 = smov [#allocation2]  }
   0x6   :  { %v365_v9 = vld [vmem:[%s1724_s5 + $0x8] sm:$0xff]  ;;  %v670_v10 = vld [vmem:[%s1726_s7] sm:$0xff]  ;;  %v1281_v48 = vmov 2102212464   ;;  %v1282_v50 = vmov 920167782  }
   0x7   :  { %v1056_v11 = vld [vmem:[%s1729_s10] sm:$0xff]  ;;  %v671_v12 = vld [vmem:[%s1726_s7 + $0x8] sm:$0xff]  ;;  %v1283_v55 = vmov 1326507024   ;;  %v1284_v61 = vmov 683565275  }
   0x8   :  { %63 = vperm.xlu0 %1226, %v55_v6   ;;  %v1057_v13 = vld [vmem:[%s1729_s10 + $0x8] sm:$0xff]  ;;  %v1058_v14 = vsub.f32 0.0, %v1056_v11  ;;  %v362_v16 = vld [vmem:[%s1723_s4] sm:$0xff]  ;;  %v1285_v63 = vmov 2475754826   ;;  %s1094_s28 = sshll.u32 %s1287_s2, 4  ;;  %s1095_s28 = int_to_ptr.vmem [resolvable:$true] %s1094_s28 }
   0x9   :  { %48 = vperm.xlu1 %1227, %v40_v7   ;;  %v1059_v15 = vsub.f32 0.0, %v1057_v13  ;;  %1163 = vmatprep.mubr.msk.f32.mxu1 %vm376_vm2, %v362_v16  ;;  %v1286_v2 = vmov 2131351028   ;;  %p1261_p1 = scmp.lt.s32.totalorder %s1095_s28, %s1095_s28 }
   0xc   :  { %368 = vperm.xlu0 %1226, %v364_v8  }
   0xd   :  { %373 = vperm.xlu1 %1227, %v365_v9  }
  0x10   :  { %674 = vperm.xlu0 %1226, %v670_v10  }
  0x11   :  { %679 = vperm.xlu1 %1227, %v671_v12  }
  0x14   :  { %1063 = vperm.xlu0 %1226, %v1058_v14  }
  0x15   :  { %1068 = vperm.xlu1 %1227, %v1059_v15  }
  0x83   :  { %v59_v17 = vpop.permute.xlu0 %58 }
  0x84   :  { %v1393_v18 = vpop.permute.xlu1 %43 }
  0x87   :  { %v64_v19 = vpop.permute.xlu0 %63 }
  0x88   :  { %v1395_v23 = vpop.permute.xlu1 %48 }
  0xd7   :  { %v1158_v20 = vpop.f32.mrb[0].mxu0 }
  0xd8   :  { %v149_v21 = vadd.f32 %v1158_v20, %v64_v19  ;;  %v143_v22 = vpop.f32.mrb[1].mxu0 }
  0xd9   :  { %v144_v24 = vadd.f32 %v143_v22, %v59_v17 }
  0xda   :  { %v1398_v25 = vmul.f32 %v149_v21, %v1395_v23 }
  0xdb   :  { %v1401_v26 = vmul.f32 %v144_v24, %v1393_v18 }
  0xdc   :  { %v261_v27 = vand.u32 2139095040, %v1398_v25  ;;  %v258_v33 = vand.u32 2147483647, %v1398_v25 }
  0xdd   :  { %v157_v28 = vand.u32 2139095040, %v1401_v26  ;;  %v154_v29 = vand.u32 2147483647, %v1401_v26  ;;  %vm156_vm1 = vcmp.lt.s32.totalorder %v1401_v26, 0 }
  0xde   :  { %v262_v30 = vshrl.u32 %v261_v27, 23  ;;  %v1411_v38 = vand.u32 8388607, %v258_v33 }
  0xdf   :  { %v158_v31 = vshrl.u32 %v157_v28, 23  ;;  %v161_v35 = vand.u32 8388607, %v154_v29 }
  0xe0   :  { %v1112_v32 = vadd.s32 4294967169, %v262_v30  ;;  %v266_v47 = vor.u32 8388608, %v1411_v38 }
  0xe1   :  { %v1108_v34 = vadd.s32 4294967169, %v158_v31  ;;  %v162_v40 = vor.u32 8388608, %v161_v35 }
  0xe2   :  { %v268_v36 = vadd.s32 1, %v1112_v32 }
  0xe3   :  { %v164_v37 = vadd.s32 1, %v1108_v34  ;;  %v1425_v53 = vshll.u32 %v162_v40, 8 }
  0xe4   :  { %vm269_vm3 = vcmp.gt.s32.totalorder %v268_v36, 0 }
  0xe5   :  { %v270_v39 = vsel %vm269_vm3, %v268_v36, 0  ;;  %vm165_vm4 = vcmp.gt.s32.totalorder %v164_v37, 0  ;;  %vm1503_vm3 = vcmp.le.f32.partialorder %v154_v29, 0.7853982 }
  0xe6   :  { %v1413_v41 = vand.u32 31, %v270_v39  ;;  %v166_v42 = vsel %vm165_vm4, %v164_v37, 0  ;;  %v1415_v43 = vshrl.u32 %v270_v39, 5  ;;  %vm260_vm4 = vcmp.lt.s32.totalorder %v1398_v25, 0 }
  0xe7   :  { %v168_v44 = vand.u32 31, %v166_v42  ;;  %v167_v46 = vshrl.u32 %v166_v42, 5 }
  0xe8   :  { %v1418_v45 = vsub.s32 32, %v1413_v41  ;;  %v284_v49 = vshll.u32 %v1281_v48, %v1413_v41  ;;  %v287_v51 = vshll.u32 %v1282_v50, %v1413_v41  ;;  %vm293_vm5 = vcmp.lt.s32.totalorder %v1415_v43, 4 }
  0xe9   :  { %v169_v52 = vsub.s32 32, %v168_v44  ;;  %v180_v57 = vshll.u32 %v1281_v48, %v168_v44  ;;  %v183_v58 = vshll.u32 %v1282_v50, %v168_v44  ;;  %v171_v62 = vshll.u32 %v1284_v61, %v168_v44 }
  0xea   :  { %v285_v54 = vshrl.u32 %v1282_v50, %v1418_v45  ;;  %v288_v56 = vshrl.u32 %v1283_v55, %v1418_v45  ;;  %vm189_vm6 = vcmp.lt.s32.totalorder %v167_v46, 4  ;;  %v174_v1 = vshll.u32 %v1285_v63, %v168_v44 }
  0xeb   :  { %v181_v59 = vshrl.u32 %v1282_v50, %v169_v52  ;;  %v184_v60 = vshrl.u32 %v1283_v55, %v169_v52  ;;  %v172_v0 = vshrl.u32 %v1285_v63, %v169_v52  ;;  %v175_v3 = vshrl.u32 %v1286_v2, %v169_v52 }
  0xec   :  { %v177_v4 = vshll.u32 %v1286_v2, %v168_v44  ;;  %v178_v8 = vshrl.u32 %v1281_v48, %v169_v52  ;;  %v286_v9 = vor.u32 %v285_v54, %v284_v49  ;;  %v289_v10 = vor.u32 %v288_v56, %v287_v51 }
  0xed   :  { %v182_v5 = vor.u32 %v181_v59, %v180_v57  ;;  %v185_v6 = vor.u32 %v184_v60, %v183_v58  ;;  %v173_v7 = vor.u32 %v172_v0, %v171_v62  ;;  %v170_v11 = vshrl.u32 %v1284_v61, %v169_v52 }
  0xee   :  { %v176_v12 = vor.u32 %v175_v3, %v174_v1  ;;  %v179_v15 = vor.u32 %v178_v8, %v177_v4  ;;  %vm186_vm7 = vcmp.lt.s32.totalorder %v167_v46, 1  ;;  %vm187_vm8 = vcmp.lt.s32.totalorder %v167_v46, 2 }
  0xef   :  { %v195_v13 = vsel %vm189_vm6, %v182_v5, 920167782  ;;  %v199_v14 = vsel %vm189_vm6, %v185_v6, 1326507024  ;;  %vm188_vm9 = vcmp.lt.s32.totalorder %v167_v46, 3  ;;  %v190_v16 = vsel %vm186_vm7, %v170_v11, %v173_v7 }
  0xf0   :  { %v194_v17 = vsel %vm186_vm7, %v173_v7, %v176_v12  ;;  %v191_v19 = vsel %vm189_vm6, %v179_v15, 2102212464  ;;  %v196_v20 = vsel %vm188_vm9, %v179_v15, %v195_v13  ;;  %v198_v21 = vsel %vm186_vm7, %v176_v12, %v179_v15 }
  0xf1   :  { %v200_v22 = vsel %vm188_vm9, %v182_v5, %v199_v14  ;;  %v192_v24 = vsel %vm188_vm9, %v176_v12, %v191_v19  ;;  %v197_v27 = vsel %vm187_vm8, %v194_v17, %v196_v20  ;;  %v275_v30 = vshll.u32 %v1284_v61, %v1413_v41 }
  0xf2   :  { %v201_v28 = vsel %vm187_vm8, %v198_v21, %v200_v22  ;;  %v193_v31 = vsel %vm187_vm8, %v190_v16, %v192_v24  ;;  %v276_v35 = vshrl.u32 %v1285_v63, %v1418_v45  ;;  %v303_v36 = vsel %vm293_vm5, %v289_v10, 1326507024 }
  0xf3   :  { %v1449_v32 = vmul.u32.u64.low %v1425_v53, %v201_v28  ;;  %v1450_v34 = vmul.u32.u64.high %v1425_v53, %v201_v28, %v1449_v32  ;;  %v1457_v37 = vmul.u32.u64.low %v1425_v53, %v197_v27  ;;  %v1458_v39 = vmul.u32.u64.high %v1425_v53, %v197_v27, %v1457_v37 }
  0xf4   :  { %v278_v40 = vshll.u32 %v1285_v63, %v1413_v41  ;;  %v277_v42 = vor.u32 %v276_v35, %v275_v30  ;;  %v279_v44 = vshrl.u32 %v1286_v2, %v1418_v45  ;;  %v281_v46 = vshll.u32 %v1286_v2, %v1413_v41 }
  0xf5   :  { %v282_v49 = vshrl.u32 %v1281_v48, %v1418_v45  ;;  %v299_v51 = vsel %vm293_vm5, %v286_v9, 920167782  ;;  %v209_v52 = vmul.u32 %v1425_v53, %v193_v31  ;;  %v274_v54 = vshrl.u32 %v1284_v61, %v1418_v45 }
  0xf6   :  { %v306_v56 = vshll.u32 %v266_v47, 8  ;;  %vm211_vm10 = vc.u32 %v1450_v34, %v1457_v37  ;;  %v280_v57 = vor.u32 %v279_v44, %v278_v40  ;;  %vm292_vm11 = vcmp.lt.s32.totalorder %v1415_v43, 3 }
  0xf7   :  { %v283_v58 = vor.u32 %v282_v49, %v281_v46  ;;  %v212_v41 = vadd.s32 1, %v1458_v39  ;;  %vm290_vm12 = vcmp.lt.s32.totalorder %v1415_v43, 1  ;;  %vm291_vm13 = vcmp.lt.s32.totalorder %v1415_v43, 2 }
  0xf8   :  { %v304_v59 = vsel %vm292_vm11, %v286_v9, %v303_v36  ;;  %v298_v45 = vsel %vm290_vm12, %v277_v42, %v280_v57  ;;  %v294_v62 = vsel %vm290_vm12, %v274_v54, %v277_v42  ;;  %v210_v32 = vadd.s32 %v1457_v37, %v1450_v34 }
  0xf9   :  { %v295_v53 = vsel %vm293_vm5, %v283_v58, 2102212464  ;;  %v300_v60 = vsel %vm292_vm11, %v283_v58, %v299_v51  ;;  %v302_v38 = vsel %vm290_vm12, %v280_v57, %v283_v58  ;;  %v213_v47 = vsel %vm211_vm10, %v212_v41, %v1458_v39 }
  0xfa   :  { %v301_v0 = vsel %vm291_vm13, %v298_v45, %v300_v60  ;;  %v305_v1 = vsel %vm291_vm13, %v302_v38, %v304_v59  ;;  %v214_v3 = vadd.s32 %v213_v47, %v209_v52  ;;  %v296_v4 = vsel %vm292_vm11, %v280_v57, %v295_v53 }
  0xfb   :  { %v1487_v5 = vmul.u32.u64.low %v306_v56, %v305_v1  ;;  %v1488_v6 = vmul.u32.u64.high %v306_v56, %v305_v1, %v1487_v5  ;;  %v1490_v7 = vmul.u32.u64.low %v306_v56, %v301_v0  ;;  %v1491_v8 = vmul.u32.u64.high %v306_v56, %v301_v0, %v1490_v7 }
  0xfc   :  { %v215_v9 = vadd.s32 536870912, %v214_v3  ;;  %v297_v10 = vsel %vm291_vm13, %v294_v62, %v296_v4  ;;  %vm259_vm5 = vcmp.le.f32.partialorder %v258_v33, 0.7853982  ;;  %vm246_vm10 = vweird.f32 %v1401_v26 }
  0xfd   :  { %vm315_vm14 = vc.u32 %v1488_v6, %v1490_v7  ;;  %v316_v12 = vadd.s32 1, %v1491_v8  ;;  %v313_v14 = vmul.u32 %v306_v56, %v297_v10  ;;  %v314_v41 = vadd.s32 %v1490_v7, %v1488_v6 }
  0xfe   :  { %v216_v11 = vshrl.u32 %v215_v9, 30  ;;  %vm350_vm13 = vweird.f32 %v1398_v25 }
  0xff   :  { %v317_v15 = vsel %vm315_vm14, %v316_v12, %v1491_v8 }
 0x100   :  { %v217_v13 = vshll.u32 %v216_v11, 30  ;;  %v318_v17 = vadd.s32 %v317_v15, %v313_v14 }
 0x102   :  { %v218_v16 = vsub.s32 %v214_v3, %v217_v13  ;;  %v319_v20 = vadd.s32 536870912, %v318_v17  ;;  %v240_v3 = vsub.s32 4, %v216_v11 }
 0x104   :  { %v220_v19 = vsub.s32 0, %v218_v16  ;;  %v320_v22 = vshrl.u32 %v319_v20, 30  ;;  %v241_v8 = vsel %vm156_vm1, %v240_v3, %v216_v11 }
 0x105   :  { %v243_v29 = vsel %vm1503_vm3, 0, %v241_v8 }
 0x106   :  { %v1109_v21 = vmin.u32 %v220_v19, %v218_v16  ;;  %v321_v27 = vshll.u32 %v320_v22, 30  ;;  %v344_v10 = vsub.s32 4, %v320_v22  ;;  %v247_v15 = vadd.s32 3, %v243_v29 }
 0x108   :  { %v222_v24 = vclz %v1109_v21  ;;  %v322_v43 = vsub.s32 %v318_v17, %v321_v27  ;;  %v345_v14 = vsel %vm260_vm4, %v344_v10, %v320_v22  ;;  %v248_v20 = vand.u32 3, %v247_v15 }
 0x109   :  { %v347_v19 = vsel %vm259_vm5, 0, %v345_v14 }
 0x10a   :  { %v1110_v28 = vadd.s32 4294967294, %v222_v24  ;;  %v324_v31 = vsub.s32 0, %v322_v43  ;;  %v351_v27 = vadd.s32 3, %v347_v19  ;;  %vm250_vm6 = vcmp.eq.s32.totalorder %v248_v20, 0 }
 0x10b   :  { %vm253_vm7 = vcmp.eq.s32.totalorder %v248_v20, 2  ;;  %vm249_vm8 = vcmp.lt.s32.totalorder %v248_v20, 2 }
 0x10c   :  { %vm1111_vm15 = vcmp.lt.s32.totalorder %v1110_v28, 0  ;;  %v1113_v39 = vmin.u32 %v324_v31, %v322_v43 }
 0x10d   :  { %v225_v30 = vsel %vm1111_vm15, 0, %v1110_v28 }
 0x10e   :  { %v226_v35 = vsub.s32 32, %v225_v30  ;;  %v230_v36 = vsub.s32 4294967266, %v225_v30  ;;  %v227_v40 = vshll.u32 %v218_v16, %v225_v30  ;;  %v326_v46 = vclz %v1113_v39 }
 0x10f   :  { %v352_v30 = vand.u32 3, %v351_v27 }
 0x110   :  { %v228_v42 = vshrl.u32 %v210_v32, %v226_v35  ;;  %v231_v44 = vadd.s32 127, %v230_v36  ;;  %v1114_v52 = vadd.s32 4294967294, %v326_v46 }
 0x111   :  { %vm357_vm9 = vcmp.eq.s32.totalorder %v352_v30, 2  ;;  %vm354_vm11 = vcmp.eq.s32.totalorder %v352_v30, 0  ;;  %vm353_vm12 = vcmp.lt.s32.totalorder %v352_v30, 2 }
 0x112   :  { %v229_v49 = vor.u32 %v228_v42, %v227_v40  ;;  %v232_v51 = vshll.u32 %v231_v44, 23  ;;  %vm1115_vm0 = vcmp.lt.s32.totalorder %v1114_v52, 0 }
 0x113   :  { %v329_v58 = vsel %vm1115_vm0, 0, %v1114_v52 }
 0x114   :  { %v233_v54 = vor.u32 4788187, %v232_v51  ;;  %v236_v57 = vcvt.s32.f32 %v229_v49  ;;  %v330_v59 = vsub.s32 32, %v329_v58  ;;  %v334_v53 = vsub.s32 4294967266, %v329_v58  ;;  %v363_v49 = vld [vmem:[%s1723_s4 + $0x8] sm:$0xff]  ;;  %v374_v51 = vpop.permute.xlu1 %373 }
 0x115   :  { %v331_v37 = vshll.u32 %v322_v43, %v329_v58 }
 0x116   :  { %v234_v56 = vand.u32 2147483647, %v233_v54  ;;  %v332_v45 = vshrl.u32 %v314_v41, %v330_v59  ;;  %v335_v60 = vadd.s32 127, %v334_v53 }
 0x118   :  { %v237_v34 = vmul.f32 %v236_v57, %v234_v56  ;;  %v333_v47 = vor.u32 %v332_v45, %v331_v37  ;;  %v336_v62 = vshll.u32 %v335_v60, 23 }
 0x11a   :  { %v238_v38 = vxor.u32 2147483648, %v237_v34  ;;  %v337_v5 = vor.u32 4788187, %v336_v62  ;;  %v340_v7 = vcvt.s32.f32 %v333_v47 }
 0x11c   :  { %v239_v1 = vsel %vm156_vm1, %v238_v38, %v237_v34  ;;  %v338_v6 = vand.u32 2147483647, %v337_v5 }
 0x11d   :  { %v242_v4 = vsel %vm1503_vm3, %v1401_v26, %v239_v1  ;;  %v668_v26 = vld [vmem:[%s1725_s6] sm:$0xff] }
 0x11e   :  { %1228 = vcosq.f32 %v242_v4  ;;  %v341_v9 = vmul.f32 %v340_v7, %v338_v6  ;;  %1170 = vmatprep.mubr.msk.f32.mxu0 %vm376_vm2, %v668_v26 }
 0x11f   :  { %1230 = vsinq.f32 %v242_v4 }
 0x120   :  { %v342_v12 = vxor.u32 2147483648, %v341_v9 }
 0x122   :  { %v343_v13 = vsel %vm260_vm4, %v342_v12, %v341_v9 }
 0x123   :  { %v346_v16 = vsel %vm259_vm5, %v1398_v25, %v343_v13  ;;  %v369_v25 = vpop.permute.xlu0 %368 }
 0x124   :  { %1232 = vcosq.f32 %v346_v16 }
 0x125   :  { %1234 = vsinq.f32 %v346_v16 }
 0x128   :  { %v1229_v17 = vpop.eup %1228 }
 0x129   :  { %v1231_v11 = vpop.eup %1230  ;;  %v254_v24 = vxor.u32 2147483648, %v1229_v17 }
 0x12a   :  { %v251_v21 = vxor.u32 2147483648, %v1231_v11 }
 0x12b   :  { %v255_v43 = vsel %vm253_vm7, %v254_v24, %v1231_v11 }
 0x12c   :  { %v252_v28 = vsel %vm250_vm6, %v1229_v17, %v251_v21 }
 0x12d   :  { %v256_v31 = vsel %vm249_vm8, %v252_v28, %v255_v43 }
 0x12e   :  { %v1233_v33 = vpop.eup %1232  ;;  %v257_v39 = vsel %vm246_vm10, nan, %v256_v31 }
 0x12f   :  { %v1235_v22 = vpop.eup %1234  ;;  %v358_v32 = vxor.u32 2147483648, %v1233_v33 }
 0x130   :  { %v355_v35 = vxor.u32 2147483648, %v1235_v22 }
 0x131   :  { %v359_v36 = vsel %vm357_vm9, %v358_v32, %v1235_v22 }
 0x132   :  { %v356_v40 = vsel %vm354_vm11, %v1233_v33, %v355_v35 }
 0x133   :  { %v360_v42 = vsel %vm353_vm12, %v356_v40, %v359_v36 }
 0x134   :  { %v361_v44 = vsel %vm350_vm13, nan, %v360_v42 }
 0x135   :  { %v1180_v46 = vpack.c.bf16 %v361_v44, %v257_v39 }
 0x137   :  { %1181 = vmatprep.subr.bf16.mxu1 %v1180_v46 }
 0x138   :  { %1183 = vmatpush3.bf16.msra.mxu1 %v1180_v46 }
 0x13b   :  { %1164 = vmatmul.mubr.msk.f32.vlgmr.msra.gmra.mrb[0].mxu1 %vm376_vm2, %v363_v49 }
 0x20e   :  { %v1165_v52 = vpop.f32.mrb[0].mxu1 }
 0x20f   :  { %v455_v54 = vadd.f32 %v1165_v52, %v374_v51  ;;  %v449_v56 = vpop.f32.mrb[1].mxu1 }
 0x210   :  { %v450_v57 = vadd.f32 %v449_v56, %v369_v25 }
 0x211   :  { %v1527_v58 = vmul.f32 %v455_v54, %v1395_v23 }
 0x212   :  { %v1530_v41 = vmul.f32 %v450_v57, %v1393_v18 }
 0x213   :  { %v564_v59 = vand.u32 2147483647, %v1527_v58  ;;  %v567_v53 = vand.u32 2139095040, %v1527_v58  ;;  %vm566_vm13 = vcmp.lt.s32.totalorder %v1527_v58, 0 }
 0x214   :  { %v463_v34 = vand.u32 2139095040, %v1530_v41  ;;  %v460_v60 = vand.u32 2147483647, %v1530_v41 }
 0x215   :  { %v568_v37 = vshrl.u32 %v567_v53, 23  ;;  %v571_v45 = vand.u32 8388607, %v564_v59 }
 0x216   :  { %v464_v38 = vshrl.u32 %v463_v34, 23  ;;  %v467_v3 = vand.u32 8388607, %v460_v60 }
 0x217   :  { %v1122_v47 = vadd.s32 4294967169, %v568_v37  ;;  %v572_v1 = vor.u32 8388608, %v571_v45 }
 0x218   :  { %v1118_v62 = vadd.s32 4294967169, %v464_v38  ;;  %v468_v10 = vor.u32 8388608, %v467_v3 }
 0x219   :  { %v574_v0 = vadd.s32 1, %v1122_v47  ;;  %v1540_v9 = vshll.u32 %v572_v1, 8 }
 0x21a   :  { %v470_v4 = vadd.s32 1, %v1118_v62 }
 0x21b   :  { %vm575_vm14 = vcmp.gt.s32.totalorder %v574_v0, 0 }
 0x21c   :  { %v576_v5 = vsel %vm575_vm14, %v574_v0, 0  ;;  %vm471_vm15 = vcmp.gt.s32.totalorder %v470_v4, 0  ;;  %vm565_vm14 = vcmp.le.f32.partialorder %v564_v59, 0.7853982 }
 0x21d   :  { %v577_v6 = vshrl.u32 %v576_v5, 5  ;;  %v578_v7 = vand.u32 31, %v576_v5  ;;  %v472_v8 = vsel %vm471_vm15, %v470_v4, 0  ;;  %vm462_vm15 = vcmp.lt.s32.totalorder %v1530_v41, 0 }
 0x21e   :  { %v1543_v13 = vshrl.u32 %v472_v8, 5  ;;  %v474_v14 = vand.u32 31, %v472_v8 }
 0x21f   :  { %v579_v29 = vsub.s32 32, %v578_v7  ;;  %v581_v12 = vshll.u32 %v1284_v61, %v578_v7  ;;  %v584_v15 = vshll.u32 %v1285_v63, %v578_v7  ;;  %v587_v16 = vshll.u32 %v1286_v2, %v578_v7 }
 0x220   :  { %v590_v17 = vshll.u32 %v1281_v48, %v578_v7  ;;  %v593_v19 = vshll.u32 %v1282_v50, %v578_v7  ;;  %vm596_vm0 = vcmp.lt.s32.totalorder %v577_v6, 1  ;;  %vm597_vm1 = vcmp.lt.s32.totalorder %v577_v6, 2 }
 0x221   :  { %v582_v11 = vshrl.u32 %v1285_v63, %v579_v29  ;;  %v585_v20 = vshrl.u32 %v1286_v2, %v579_v29  ;;  %v588_v21 = vshrl.u32 %v1281_v48, %v579_v29  ;;  %v580_v24 = vshrl.u32 %v1284_v61, %v579_v29 }
 0x222   :  { %v591_v27 = vshrl.u32 %v1282_v50, %v579_v29  ;;  %v594_v28 = vshrl.u32 %v1283_v55, %v579_v29  ;;  %v475_v22 = vsub.s32 32, %v474_v14  ;;  %vm598_vm3 = vcmp.lt.s32.totalorder %v577_v6, 3 }
 0x223   :  { %v583_v43 = vor.u32 %v582_v11, %v581_v12  ;;  %v586_v30 = vor.u32 %v585_v20, %v584_v15  ;;  %v589_v33 = vor.u32 %v588_v21, %v587_v16  ;;  %vm599_vm4 = vcmp.lt.s32.totalorder %v577_v6, 4 }
 0x224   :  { %v592_v31 = vor.u32 %v591_v27, %v590_v17  ;;  %v595_v32 = vor.u32 %v594_v28, %v593_v19  ;;  %v477_v49 = vshll.u32 %v1284_v61, %v474_v14  ;;  %v478_v52 = vshrl.u32 %v1285_v63, %v475_v22 }
 0x225   :  { %v600_v35 = vsel %vm596_vm0, %v580_v24, %v583_v43  ;;  %v601_v36 = vsel %vm599_vm4, %v589_v33, 2102212464  ;;  %v604_v39 = vsel %vm596_vm0, %v583_v43, %v586_v30  ;;  %v608_v40 = vsel %vm596_vm0, %v586_v30, %v589_v33 }
 0x226   :  { %v602_v42 = vsel %vm598_vm3, %v586_v30, %v601_v36  ;;  %v605_v44 = vsel %vm599_vm4, %v592_v31, 920167782  ;;  %v609_v46 = vsel %vm599_vm4, %v595_v32, 1326507024  ;;  %v480_v25 = vshll.u32 %v1285_v63, %v474_v14 }
 0x227   :  { %v606_v26 = vsel %vm598_vm3, %v589_v33, %v605_v44  ;;  %v610_v51 = vsel %vm598_vm3, %v592_v31, %v609_v46  ;;  %v603_v54 = vsel %vm597_vm1, %v600_v35, %v602_v42  ;;  %v481_v53 = vshrl.u32 %v1286_v2, %v475_v22 }
 0x228   :  { %v607_v56 = vsel %vm597_vm1, %v604_v39, %v606_v26  ;;  %v611_v57 = vsel %vm597_vm1, %v608_v40, %v610_v51  ;;  %v479_v47 = vor.u32 %v478_v52, %v477_v49  ;;  %v483_v0 = vshll.u32 %v1286_v2, %v474_v14 }
 0x229   :  { %v1566_v34 = vmul.u32.u64.low %v1540_v9, %v611_v57  ;;  %v1567_v37 = vmul.u32.u64.high %v1540_v9, %v611_v57, %v1566_v34  ;;  %v1570_v45 = vmul.u32.u64.low %v1540_v9, %v607_v56  ;;  %v1571_v38 = vmul.u32.u64.high %v1540_v9, %v607_v56, %v1570_v45 }
 0x22a   :  { %v482_v62 = vor.u32 %v481_v53, %v480_v25  ;;  %v484_v1 = vshrl.u32 %v1281_v48, %v475_v22  ;;  %v486_v3 = vshll.u32 %v1281_v48, %v474_v14  ;;  %v487_v4 = vshrl.u32 %v1282_v50, %v475_v22 }
 0x22b   :  { %v490_v5 = vshrl.u32 %v1283_v55, %v475_v22  ;;  %v508_v6 = vshll.u32 %v468_v10, 8  ;;  %v619_v7 = vmul.u32 %v1540_v9, %v603_v54  ;;  %v476_v8 = vshrl.u32 %v1284_v61, %v475_v22 }
 0x22c   :  { %v485_v29 = vor.u32 %v484_v1, %v483_v0  ;;  %v489_v12 = vshll.u32 %v1282_v50, %v474_v14  ;;  %vm621_vm5 = vc.u32 %v1567_v37, %v1570_v45  ;;  %v622_v15 = vadd.s32 1, %v1571_v38 }
 0x22d   :  { %v488_v16 = vor.u32 %v487_v4, %v486_v3  ;;  %vm492_vm6 = vcmp.lt.s32.totalorder %v1543_v13, 1  ;;  %vm494_vm7 = vcmp.lt.s32.totalorder %v1543_v13, 3  ;;  %vm495_vm8 = vcmp.lt.s32.totalorder %v1543_v13, 4 }
 0x22e   :  { %v491_v17 = vor.u32 %v490_v5, %v489_v12  ;;  %v500_v10 = vsel %vm492_vm6, %v479_v47, %v482_v62  ;;  %v623_v9 = vsel %vm621_vm5, %v622_v15, %v1571_v38  ;;  %v497_v19 = vsel %vm495_vm8, %v485_v29, 2102212464 }
 0x22f   :  { %v501_v11 = vsel %vm495_vm8, %v488_v16, 920167782  ;;  %v504_v20 = vsel %vm492_vm6, %v482_v62, %v485_v29  ;;  %v624_v21 = vadd.s32 %v623_v9, %v619_v7  ;;  %vm493_vm9 = vcmp.lt.s32.totalorder %v1543_v13, 2 }
 0x230   :  { %v502_v14 = vsel %vm494_vm7, %v485_v29, %v501_v11  ;;  %v505_v24 = vsel %vm495_vm8, %v491_v17, 1326507024  ;;  %v496_v27 = vsel %vm492_vm6, %v476_v8, %v479_v47  ;;  %v498_v28 = vsel %vm494_vm7, %v482_v62, %v497_v19 }
 0x231   :  { %v503_v43 = vsel %vm493_vm9, %v500_v10, %v502_v14  ;;  %v506_v30 = vsel %vm494_vm7, %v488_v16, %v505_v24  ;;  %v625_v33 = vadd.s32 536870912, %v624_v21  ;;  %v499_v40 = vsel %vm493_vm9, %v496_v27, %v498_v28 }
 0x232   :  { %v507_v22 = vsel %vm493_vm9, %v504_v20, %v506_v30  ;;  %v1588_v31 = vmul.u32.u64.low %v508_v6, %v503_v43  ;;  %v1589_v32 = vmul.u32.u64.high %v508_v6, %v503_v43, %v1588_v31  ;;  %v515_v13 = vmul.u32 %v508_v6, %v499_v40 }
 0x233   :  { %v1591_v35 = vmul.u32.u64.low %v508_v6, %v507_v22  ;;  %v1592_v36 = vmul.u32.u64.high %v508_v6, %v507_v22, %v1591_v35  ;;  %v626_v39 = vshrl.u32 %v625_v33, 30  ;;  %v620_v62 = vadd.s32 %v1570_v45, %v1567_v37 }
 0x234   :  { %v518_v44 = vadd.s32 1, %v1589_v32  ;;  %vm461_vm0 = vcmp.le.f32.partialorder %v460_v60, 0.7853982  ;;  %vm656_vm5 = vweird.f32 %v1527_v58  ;;  %vm552_vm9 = vweird.f32 %v1530_v41 }
 0x235   :  { %v627_v42 = vshll.u32 %v626_v39, 30  ;;  %vm517_vm10 = vc.u32 %v1592_v36, %v1588_v31  ;;  %v516_v9 = vadd.s32 %v1588_v31, %v1592_v36  ;;  %v650_v45 = vsub.s32 4, %v626_v39 }
 0x236   :  { %v519_v49 = vsel %vm517_vm10, %v518_v44, %v1589_v32 }
 0x237   :  { %v628_v46 = vsub.s32 %v624_v21, %v627_v42  ;;  %v520_v26 = vadd.s32 %v519_v49, %v515_v13  ;;  %v651_v30 = vsel %vm566_vm13, %v650_v45, %v626_v39 }
 0x238   :  { %v653_v35 = vsel %vm565_vm14, 0, %v651_v30 }
 0x239   :  { %v630_v51 = vsub.s32 0, %v628_v46  ;;  %v521_v52 = vadd.s32 536870912, %v520_v26  ;;  %v657_v42 = vadd.s32 3, %v653_v35 }
 0x23b   :  { %v1123_v25 = vmin.u32 %v630_v51, %v628_v46  ;;  %v522_v54 = vshrl.u32 %v521_v52, 30 }
 0x23d   :  { %v632_v56 = vclz %v1123_v25  ;;  %v523_v57 = vshll.u32 %v522_v54, 30  ;;  %v546_v40 = vsub.s32 4, %v522_v54 }
 0x23f   :  { %v1124_v53 = vadd.s32 4294967294, %v632_v56  ;;  %v524_v34 = vsub.s32 %v520_v26, %v523_v57  ;;  %v547_v59 = vsel %vm462_vm15, %v546_v40, %v522_v54 }
 0x240   :  { %v549_v26 = vsel %vm461_vm0, 0, %v547_v59 }
 0x241   :  { %vm1125_vm11 = vcmp.lt.s32.totalorder %v1124_v53, 0  ;;  %v526_v47 = vsub.s32 0, %v524_v34  ;;  %v553_v56 = vadd.s32 3, %v549_v26 }
 0x242   :  { %v635_v38 = vsel %vm1125_vm11, 0, %v1124_v53 }
 0x243   :  { %v636_v0 = vsub.s32 32, %v635_v38  ;;  %v640_v1 = vsub.s32 4294967266, %v635_v38  ;;  %v1119_v3 = vmin.u32 %v526_v47, %v524_v34  ;;  %v637_v4 = vshll.u32 %v628_v46, %v635_v38 }
 0x244   :  { %v658_v46 = vand.u32 3, %v657_v42 }
 0x245   :  { %v638_v5 = vshrl.u32 %v620_v62, %v636_v0  ;;  %v641_v6 = vadd.s32 127, %v640_v1  ;;  %v528_v7 = vclz %v1119_v3 }
 0x246   :  { %vm663_vm1 = vcmp.eq.s32.totalorder %v658_v46, 2  ;;  %vm660_vm3 = vcmp.eq.s32.totalorder %v658_v46, 0  ;;  %vm659_vm4 = vcmp.lt.s32.totalorder %v658_v46, 2 }
 0x247   :  { %v639_v8 = vor.u32 %v638_v5, %v637_v4  ;;  %v642_v29 = vshll.u32 %v641_v6, 23  ;;  %v1120_v12 = vadd.s32 4294967294, %v528_v7  ;;  %v973_v7 = vld [vmem:[%s1727_s8] sm:$0xff] }
 0x248   :  { %1177 = vmatprep.mubr.msk.f32.mxu1 %vm376_vm2, %v973_v7 }
 0x249   :  { %v643_v15 = vor.u32 4788187, %v642_v29  ;;  %vm1121_vm12 = vcmp.lt.s32.totalorder %v1120_v12, 0  ;;  %v646_v17 = vcvt.s32.f32 %v639_v8  ;;  %v680_v8 = vpop.permute.xlu1 %679 }
 0x24a   :  { %v531_v10 = vsel %vm1121_vm12, 0, %v1120_v12 }
 0x24b   :  { %v644_v16 = vand.u32 2147483647, %v643_v15  ;;  %v532_v19 = vsub.s32 32, %v531_v10  ;;  %v536_v11 = vsub.s32 4294967266, %v531_v10  ;;  %v533_v20 = vshll.u32 %v524_v34, %v531_v10 }
 0x24c   :  { %v554_v34 = vand.u32 3, %v553_v56 }
 0x24d   :  { %v647_v37 = vmul.f32 %v646_v17, %v644_v16  ;;  %v534_v21 = vshrl.u32 %v516_v9, %v532_v19  ;;  %v537_v14 = vadd.s32 127, %v536_v11 }
 0x24e   :  { %vm559_vm6 = vcmp.eq.s32.totalorder %v554_v34, 2  ;;  %vm556_vm7 = vcmp.eq.s32.totalorder %v554_v34, 0  ;;  %vm555_vm8 = vcmp.lt.s32.totalorder %v554_v34, 2 }
 0x24f   :  { %v648_v24 = vxor.u32 2147483648, %v647_v37  ;;  %v535_v27 = vor.u32 %v534_v21, %v533_v20  ;;  %v538_v28 = vshll.u32 %v537_v14, 23 }
 0x251   :  { %v649_v43 = vsel %vm566_vm13, %v648_v24, %v647_v37  ;;  %v539_v33 = vor.u32 4788187, %v538_v28  ;;  %v542_v32 = vcvt.s32.f32 %v535_v27 }
 0x252   :  { %v652_v22 = vsel %vm565_vm14, %v1527_v58, %v649_v43  ;;  %v669_v58 = vld [vmem:[%s1725_s6 + $0x8] sm:$0xff] }
 0x253   :  { %1236 = vcosq.f32 %v652_v22  ;;  %v540_v31 = vand.u32 2147483647, %v539_v33 }
 0x254   :  { %1238 = vsinq.f32 %v652_v22 }
 0x255   :  { %v543_v36 = vmul.f32 %v542_v32, %v540_v31 }
 0x257   :  { %v544_v44 = vxor.u32 2147483648, %v543_v36 }
 0x259   :  { %v545_v13 = vsel %vm462_vm15, %v544_v44, %v543_v36 }
 0x25a   :  { %v548_v39 = vsel %vm461_vm0, %v1530_v41, %v545_v13  ;;  %v675_v41 = vpop.permute.xlu0 %674 }
 0x25b   :  { %1240 = vcosq.f32 %v548_v39 }
 0x25c   :  { %1242 = vsinq.f32 %v548_v39 }
 0x25d   :  { %v1237_v49 = vpop.eup %1236 }
 0x25e   :  { %v1239_v51 = vpop.eup %1238  ;;  %v664_v52 = vxor.u32 2147483648, %v1237_v49 }
 0x25f   :  { %v661_v25 = vxor.u32 2147483648, %v1239_v51 }
 0x260   :  { %v665_v57 = vsel %vm663_vm1, %v664_v52, %v1239_v51 }
 0x261   :  { %v662_v53 = vsel %vm660_vm3, %v1237_v49, %v661_v25 }
 0x262   :  { %v666_v60 = vsel %vm659_vm4, %v662_v53, %v665_v57 }
 0x263   :  { %v667_v54 = vsel %vm656_vm5, nan, %v666_v60 }
 0x265   :  { %v1241_v38 = vpop.eup %1240 }
 0x266   :  { %v1243_v47 = vpop.eup %1242  ;;  %v560_v62 = vxor.u32 2147483648, %v1241_v38 }
 0x267   :  { %v557_v0 = vxor.u32 2147483648, %v1243_v47 }
 0x268   :  { %v561_v1 = vsel %vm559_vm6, %v560_v62, %v1243_v47 }
 0x269   :  { %v558_v3 = vsel %vm556_vm7, %v1241_v38, %v557_v0 }
 0x26a   :  { %v562_v4 = vsel %vm555_vm8, %v558_v3, %v561_v1 }
 0x26b   :  { %v563_v5 = vsel %vm552_vm9, nan, %v562_v4 }
 0x26c   :  { %v1184_v6 = vpack.c.bf16 %v667_v54, %v563_v5 }
 0x26e   :  { %1185 = vmatprep.subr.bf16.mxu0 %v1184_v6 }
 0x26f   :  { %1187 = vmatpush3.bf16.msra.mxu0 %v1184_v6 }
 0x272   :  { %1171 = vmatmul.mubr.msk.f32.vlgmr.msra.gmra.mrb[2].mxu0 %vm376_vm2, %v669_v58 }
 0x345   :  { %v1172_v29 = vpop.f32.mrb[2].mxu0 }
 0x346   :  { %v760_v12 = vadd.f32 %v1172_v29, %v680_v8  ;;  %v754_v15 = vpop.f32.mrb[3].mxu0 }
 0x347   :  { %v755_v16 = vadd.f32 %v754_v15, %v675_v41 }
 0x348   :  { %v1618_v17 = vmul.f32 %v760_v12, %v1395_v23 }
 0x349   :  { %v1621_v10 = vmul.f32 %v755_v16, %v1393_v18 }
 0x34a   :  { %v869_v9 = vand.u32 2147483647, %v1618_v17  ;;  %v872_v19 = vand.u32 2139095040, %v1618_v17  ;;  %vm871_vm9 = vcmp.lt.s32.totalorder %v1618_v17, 0 }
 0x34b   :  { %v768_v11 = vand.u32 2139095040, %v1621_v10  ;;  %v765_v20 = vand.u32 2147483647, %v1621_v10 }
 0x34c   :  { %v873_v37 = vshrl.u32 %v872_v19, 23  ;;  %v876_v45 = vand.u32 8388607, %v869_v9 }
 0x34d   :  { %v769_v21 = vshrl.u32 %v768_v11, 23  ;;  %v772_v18 = vand.u32 8388607, %v765_v20 }
 0x34e   :  { %v1132_v14 = vadd.s32 4294967169, %v873_v37  ;;  %v877_v27 = vor.u32 8388608, %v876_v45 }
 0x34f   :  { %v1128_v24 = vadd.s32 4294967169, %v769_v21  ;;  %v773_v32 = vor.u32 8388608, %v772_v18 }
 0x350   :  { %v879_v23 = vadd.s32 1, %v1132_v14  ;;  %v1631_v31 = vshll.u32 %v877_v27, 8 }
 0x351   :  { %v775_v28 = vadd.s32 1, %v1128_v24  ;;  %v813_v18 = vshll.u32 %v773_v32, 8 }
 0x352   :  { %vm880_vm10 = vcmp.gt.s32.totalorder %v879_v23, 0 }
 0x353   :  { %v881_v43 = vsel %vm880_vm10, %v879_v23, 0  ;;  %vm776_vm11 = vcmp.gt.s32.totalorder %v775_v28, 0  ;;  %vm870_vm10 = vcmp.le.f32.partialorder %v869_v9, 0.7853982 }
 0x354   :  { %v882_v30 = vshrl.u32 %v881_v43, 5  ;;  %v883_v33 = vand.u32 31, %v881_v43  ;;  %v777_v22 = vsel %vm776_vm11, %v775_v28, 0  ;;  %vm767_vm11 = vcmp.lt.s32.totalorder %v1621_v10, 0 }
 0x355   :  { %v1634_v40 = vshrl.u32 %v777_v22, 5  ;;  %v779_v42 = vand.u32 31, %v777_v22 }
 0x356   :  { %v884_v35 = vsub.s32 32, %v883_v33  ;;  %v886_v36 = vshll.u32 %v1284_v61, %v883_v33  ;;  %v889_v44 = vshll.u32 %v1285_v63, %v883_v33  ;;  %v892_v13 = vshll.u32 %v1286_v2, %v883_v33 }
 0x357   :  { %v895_v59 = vshll.u32 %v1281_v48, %v883_v33  ;;  %v898_v39 = vshll.u32 %v1282_v50, %v883_v33  ;;  %vm901_vm12 = vcmp.lt.s32.totalorder %v882_v30, 1  ;;  %vm902_vm13 = vcmp.lt.s32.totalorder %v882_v30, 2 }
 0x358   :  { %v887_v46 = vshrl.u32 %v1285_v63, %v884_v35  ;;  %v890_v49 = vshrl.u32 %v1286_v2, %v884_v35  ;;  %v893_v26 = vshrl.u32 %v1281_v48, %v884_v35  ;;  %v885_v51 = vshrl.u32 %v1284_v61, %v884_v35 }
 0x359   :  { %v896_v52 = vshrl.u32 %v1282_v50, %v884_v35  ;;  %v899_v25 = vshrl.u32 %v1283_v55, %v884_v35  ;;  %v780_v60 = vsub.s32 32, %v779_v42  ;;  %vm903_vm14 = vcmp.lt.s32.totalorder %v882_v30, 3 }
 0x35a   :  { %v888_v56 = vor.u32 %v887_v46, %v886_v36  ;;  %v891_v57 = vor.u32 %v890_v49, %v889_v44  ;;  %v894_v53 = vor.u32 %v893_v26, %v892_v13  ;;  %vm904_vm15 = vcmp.lt.s32.totalorder %v882_v30, 4 }
 0x35b   :  { %v897_v54 = vor.u32 %v896_v52, %v895_v59  ;;  %v900_v34 = vor.u32 %v899_v25, %v898_v39  ;;  %v782_v5 = vshll.u32 %v1284_v61, %v779_v42  ;;  %v783_v7 = vshrl.u32 %v1285_v63, %v780_v60 }
 0x35c   :  { %v905_v38 = vsel %vm901_vm12, %v885_v51, %v888_v56  ;;  %v906_v47 = vsel %vm904_vm15, %v894_v53, 2102212464  ;;  %v909_v62 = vsel %vm901_vm12, %v888_v56, %v891_v57  ;;  %v913_v0 = vsel %vm901_vm12, %v891_v57, %v894_v53 }
 0x35d   :  { %v907_v1 = vsel %vm903_vm14, %v891_v57, %v906_v47  ;;  %v910_v3 = vsel %vm904_vm15, %v897_v54, 920167782  ;;  %v914_v4 = vsel %vm904_vm15, %v900_v34, 1326507024  ;;  %v785_v8 = vshll.u32 %v1285_v63, %v779_v42 }
 0x35e   :  { %v911_v6 = vsel %vm903_vm14, %v894_v53, %v910_v3  ;;  %v915_v58 = vsel %vm903_vm14, %v897_v54, %v914_v4  ;;  %v908_v29 = vsel %vm902_vm13, %v905_v38, %v907_v1  ;;  %v786_v15 = vshrl.u32 %v1286_v2, %v780_v60 }
 0x35f   :  { %v912_v41 = vsel %vm902_vm13, %v909_v62, %v911_v6  ;;  %v916_v12 = vsel %vm902_vm13, %v913_v0, %v915_v58  ;;  %v784_v45 = vor.u32 %v783_v7, %v782_v5  ;;  %v788_v63 = vshll.u32 %v1286_v2, %v779_v42 }
 0x360   :  { %v1657_v16 = vmul.u32.u64.low %v1631_v31, %v916_v12  ;;  %v1658_v19 = vmul.u32.u64.high %v1631_v31, %v916_v12, %v1657_v16  ;;  %v1661_v11 = vmul.u32.u64.low %v1631_v31, %v912_v41  ;;  %v1662_v37 = vmul.u32.u64.high %v1631_v31, %v912_v41, %v1661_v11 }
 0x361   :  { %v787_v21 = vor.u32 %v786_v15, %v785_v8  ;;  %v789_v14 = vshrl.u32 %v1281_v48, %v780_v60  ;;  %v791_v24 = vshll.u32 %v1281_v48, %v779_v42  ;;  %v792_v23 = vshrl.u32 %v1282_v50, %v780_v60 }
 0x362   :  { %v795_v27 = vshrl.u32 %v1283_v55, %v780_v60  ;;  %v924_v28 = vmul.u32 %v1631_v31, %v908_v29  ;;  %v781_v43 = vshrl.u32 %v1284_v61, %v780_v60  ;;  %v794_v33 = vshll.u32 %v1282_v50, %v779_v42 }
 0x363   :  { %v790_v30 = vor.u32 %v789_v14, %v788_v63  ;;  %vm926_vm0 = vc.u32 %v1658_v19, %v1661_v11  ;;  %v927_v2 = vadd.s32 1, %v1662_v37  ;;  %v793_v22 = vor.u32 %v792_v23, %v791_v24 }
 0x364   :  { %vm797_vm1 = vcmp.lt.s32.totalorder %v1634_v40, 1  ;;  %v796_v48 = vor.u32 %v795_v27, %v794_v33  ;;  %vm799_vm3 = vcmp.lt.s32.totalorder %v1634_v40, 3  ;;  %vm800_vm4 = vcmp.lt.s32.totalorder %v1634_v40, 4 }
 0x365   :  { %v805_v55 = vsel %vm797_vm1, %v784_v45, %v787_v21  ;;  %v928_v31 = vsel %vm926_vm0, %v927_v2, %v1662_v37  ;;  %v802_v32 = vsel %vm800_vm4, %v790_v30, 2102212464  ;;  %v806_v61 = vsel %vm800_vm4, %v793_v22, 920167782 }
 0x366   :  { %v809_v35 = vsel %vm797_vm1, %v787_v21, %v790_v30  ;;  %v929_v36 = vadd.s32 %v928_v31, %v924_v28  ;;  %vm798_vm5 = vcmp.lt.s32.totalorder %v1634_v40, 2  ;;  %v807_v50 = vsel %vm799_vm3, %v790_v30, %v806_v61 }
 0x367   :  { %v810_v42 = vsel %vm800_vm4, %v796_v48, 1326507024  ;;  %v801_v44 = vsel %vm797_vm1, %v781_v43, %v784_v45  ;;  %v803_v13 = vsel %vm799_vm3, %v787_v21, %v802_v32  ;;  %v808_v59 = vsel %vm798_vm5, %v805_v55, %v807_v50 }
 0x368   :  { %v811_v39 = vsel %vm799_vm3, %v793_v22, %v810_v42  ;;  %v930_v46 = vadd.s32 536870912, %v929_v36  ;;  %v1679_v26 = vmul.u32.u64.low %v813_v18, %v808_v59  ;;  %v1680_v51 = vmul.u32.u64.high %v813_v18, %v808_v59, %v1679_v26 }
 0x369   :  { %v812_v49 = vsel %vm798_vm5, %v809_v35, %v811_v39  ;;  %v804_v57 = vsel %vm798_vm5, %v801_v44, %v803_v13  ;;  %v925_v8 = vadd.s32 %v1661_v11, %v1658_v19  ;;  %vm766_vm12 = vcmp.le.f32.partialorder %v765_v20, 0.7853982 }
 0x36a   :  { %v1682_v52 = vmul.u32.u64.low %v813_v18, %v812_v49  ;;  %v1683_v25 = vmul.u32.u64.high %v813_v18, %v812_v49, %v1682_v52  ;;  %v931_v56 = vshrl.u32 %v930_v46, 30  ;;  %v823_v60 = vadd.s32 1, %v1680_v51 }
 0x36b   :  { %v820_v40 = vmul.u32 %v813_v18, %v804_v57  ;;  %vm961_vm0 = vweird.f32 %v1618_v17  ;;  %vm857_vm5 = vweird.f32 %v1621_v10 }
 0x36c   :  { %v932_v53 = vshll.u32 %v931_v56, 30  ;;  %vm822_vm6 = vc.u32 %v1683_v25, %v1679_v26  ;;  %v821_v28 = vadd.s32 %v1679_v26, %v1683_v25  ;;  %v955_v11 = vsub.s32 4, %v931_v56 }
 0x36d   :  { %v824_v34 = vsel %vm822_vm6, %v823_v60, %v1680_v51 }
 0x36e   :  { %v933_v54 = vsub.s32 %v929_v36, %v932_v53  ;;  %v825_v38 = vadd.s32 %v824_v34, %v820_v40  ;;  %v956_v61 = vsel %vm871_vm9, %v955_v11, %v931_v56 }
 0x36f   :  { %v958_v44 = vsel %vm870_vm10, 0, %v956_v61 }
 0x370   :  { %v935_v47 = vsub.s32 0, %v933_v54  ;;  %v826_v62 = vadd.s32 536870912, %v825_v38  ;;  %v962_v39 = vadd.s32 3, %v958_v44 }
 0x372   :  { %v1133_v0 = vmin.u32 %v935_v47, %v933_v54  ;;  %v827_v1 = vshrl.u32 %v826_v62, 30  ;;  %v963_v51 = vand.u32 3, %v962_v39 }
 0x374   :  { %v937_v3 = vclz %v1133_v0  ;;  %v828_v4 = vshll.u32 %v827_v1, 30  ;;  %v851_v59 = vsub.s32 4, %v827_v1  ;;  %vm968_vm13 = vcmp.eq.s32.totalorder %v963_v51, 2 }
 0x375   :  { %vm965_vm14 = vcmp.eq.s32.totalorder %v963_v51, 0  ;;  %vm964_vm15 = vcmp.lt.s32.totalorder %v963_v51, 2 }
 0x376   :  { %v1134_v5 = vadd.s32 4294967294, %v937_v3  ;;  %v829_v6 = vsub.s32 %v825_v38, %v828_v4  ;;  %v852_v9 = vsel %vm767_vm11, %v851_v59, %v827_v1 }
 0x377   :  { %v854_v25 = vsel %vm766_vm12, 0, %v852_v9 }
 0x378   :  { %vm1135_vm7 = vcmp.lt.s32.totalorder %v1134_v5, 0  ;;  %v831_v7 = vsub.s32 0, %v829_v6  ;;  %v858_v60 = vadd.s32 3, %v854_v25 }
 0x379   :  { %v940_v58 = vsel %vm1135_vm7, 0, %v1134_v5 }
 0x37a   :  { %v941_v29 = vsub.s32 32, %v940_v58  ;;  %v945_v41 = vsub.s32 4294967266, %v940_v58  ;;  %v1129_v12 = vmin.u32 %v831_v7, %v829_v6  ;;  %v942_v15 = vshll.u32 %v933_v54, %v940_v58  ;;  %v1069_v7 = vpop.permute.xlu1 %1068 }
 0x37b   :  { %v859_v38 = vand.u32 3, %v858_v60 }
 0x37c   :  { %v943_v16 = vshrl.u32 %v925_v8, %v941_v29  ;;  %v946_v37 = vadd.s32 127, %v945_v41  ;;  %v833_v45 = vclz %v1129_v12  ;;  %v1138_v8 = vld [vmem:[%s1720_s1] ss:$0 sm:$0xff]  ;;  %v1064_v29 = vpop.permute.xlu0 %1063 }
 0x37d   :  { %vm864_vm1 = vcmp.eq.s32.totalorder %v859_v38, 2  ;;  %vm861_vm3 = vcmp.eq.s32.totalorder %v859_v38, 0  ;;  %vm860_vm4 = vcmp.lt.s32.totalorder %v859_v38, 2  ;;  %v1078_v41 = vmul.f32 %v1138_v8, %v1069_v7 }
 0x37e   :  { %v944_v21 = vor.u32 %v943_v16, %v942_v15  ;;  %v947_v63 = vshll.u32 %v946_v37, 23  ;;  %v1130_v14 = vadd.s32 4294967294, %v833_v45  ;;  %v1077_v12 = vmul.f32 %v1138_v8, %v1064_v29 }
 0x380   :  { %v948_v24 = vor.u32 4788187, %v947_v63  ;;  %vm1131_vm8 = vcmp.lt.s32.totalorder %v1130_v14, 0  ;;  %v951_v27 = vcvt.s32.f32 %v944_v21  ;;  %v1079_v15 = vmul.f32 1.442695, %v1077_v12 }
 0x381   :  { %v836_v18 = vsel %vm1131_vm8, 0, %v1130_v14 }
 0x382   :  { %v949_v23 = vand.u32 2147483647, %v948_v24  ;;  %v837_v43 = vsub.s32 32, %v836_v18  ;;  %v841_v30 = vsub.s32 4294967266, %v836_v18  ;;  %v838_v33 = vshll.u32 %v829_v6, %v836_v18 }
 0x384   :  { %v952_v19 = vmul.f32 %v951_v27, %v949_v23  ;;  %v839_v2 = vshrl.u32 %v821_v28, %v837_v43  ;;  %v842_v22 = vadd.s32 127, %v841_v30 }
 0x386   :  { %v953_v48 = vxor.u32 2147483648, %v952_v19  ;;  %v840_v55 = vor.u32 %v839_v2, %v838_v33  ;;  %v843_v31 = vshll.u32 %v842_v22, 23 }
 0x388   :  { %v954_v32 = vsel %vm871_vm9, %v953_v48, %v952_v19  ;;  %v844_v35 = vor.u32 4788187, %v843_v31  ;;  %v847_v42 = vcvt.s32.f32 %v840_v55 }
 0x389   :  { %v957_v36 = vsel %vm870_vm10, %v1618_v17, %v954_v32  ;;  %v974_v17 = vld [vmem:[%s1727_s8 + $0x8] sm:$0xff]  ;;  %s1256_s8 = scalar_lea.vmem %s1095_s28, 256 }
 0x38a   :  { %1244 = vcosq.f32 %v957_v36  ;;  %v845_v50 = vand.u32 2147483647, %v844_v35  ;;  %p1257_p0 = scmp.ne.s32.totalorder %s1095_s28, %s1256_s8  ;;  %p1262_p2 = scmp.lt.s32.totalorder %s1256_s8, %s1256_s8 }
 0x38b   :  { %1246 = vsinq.f32 %v957_v36 }
 0x38c   :  { %v848_v13 = vmul.f32 %v847_v42, %v845_v50  ;;  %p1263_p3 = por %p1262_p2, %p1261_p1 }
 0x38e   :  { %v849_v46 = vxor.u32 2147483648, %v848_v13  ;;  %p1264_p4 = pnand %p1263_p3, %p1257_p0 }
 0x390   :  { %v850_v49 = vsel %vm767_vm11, %v849_v46, %v848_v13 }
 0x391   :  { %v853_v26 = vsel %vm766_vm12, %v1621_v10, %v850_v49  ;;  %v1081_v10 = vmul.f32 1.442695, %v1078_v41 }
 0x392   :  { %1248 = vcosq.f32 %v853_v26 }
 0x393   :  { %1250 = vsinq.f32 %v853_v26 }
 0x394   :  { %v1245_v52 = vpop.eup %1244  ;;  %1252 = vpow2.f32 %v1081_v10 }
 0x395   :  { %v1247_v56 = vpop.eup %1246  ;;  %v969_v57 = vxor.u32 2147483648, %v1245_v52  ;;  %1254 = vpow2.f32 %v1079_v15 }
 0x396   :  { %v966_v53 = vxor.u32 2147483648, %v1247_v56 }
 0x397   :  { %v970_v40 = vsel %vm968_vm13, %v969_v57, %v1247_v56 }
 0x398   :  { %v967_v54 = vsel %vm965_vm14, %v1245_v52, %v966_v53 }
 0x399   :  { %v971_v20 = vsel %vm964_vm15, %v967_v54, %v970_v40 }
 0x39a   :  { %v972_v34 = vsel %vm961_vm0, nan, %v971_v20 }
 0x39c   :  { %v1249_v47 = vpop.eup %1248 }
 0x39d   :  { %v1251_v62 = vpop.eup %1250  ;;  %v865_v0 = vxor.u32 2147483648, %v1249_v47 }
 0x39e   :  { %v862_v1 = vxor.u32 2147483648, %v1251_v62  ;;  %v1253_v16 = vpop.eup %1252 }
 0x39f   :  { %v866_v3 = vsel %vm864_vm1, %v865_v0, %v1251_v62  ;;  %v1255_v45 = vpop.eup %1254 }
 0x3a0   :  { %v863_v4 = vsel %vm861_vm3, %v1249_v47, %v862_v1 }
 0x3a1   :  { %v867_v5 = vsel %vm860_vm4, %v863_v4, %v866_v3 }
 0x3a2   :  { %v868_v6 = vsel %vm857_vm5, nan, %v867_v5 }
 0x3a3   :  { %v1188_v58 = vpack.c.bf16 %v972_v34, %v868_v6 }
 0x3a5   :  { %1189 = vmatprep.subr.bf16.mxu1 %v1188_v58 }
 0x3a6   :  { %1191 = vmatpush3.bf16.msra.mxu1 %v1188_v58 }
 0x3a9   :  { %1178 = vmatmul.mubr.msk.f32.vlgmr.msra.gmra.mrb[2].mxu1 %vm376_vm2, %v974_v17 }
 0x47c   :  { %v1179_v37 = vpop.f32.mrb[2].mxu1 }
 0x47d   :  { %v1086_v21 = vmul.f32 %v1253_v16, %v1179_v37  ;;  %v1047_v63 = vpop.f32.mrb[3].mxu1 }
 0x47e   :  { %v1085_v14 = vmul.f32 %v1255_v45, %v1047_v63 }
 0x47f   :  { %1088 = vst [vmem:[#allocation2 + $0x8] sm:$0xff] %v1086_v21 }
 0x480   :  { %1087 = vst [vmem:[#allocation2] sm:$0xff] %v1085_v14 }
 0x481   :  { %1267 = shalt.err (!%p1264_p4)
}
 0x482   :  { %s1268_s30 = scalar_lea.hbm %s1730_s11, 256 }
 0x483   :  { %p1269_p5 = scmp.ne.s32.totalorder %s1730_s11, %s1268_s30  ;;  %p1272_p6 = scmp.lt.u32.totalorder %s1268_s30, %s1730_s11 }
 0x485   :  { %p1274_p7 = pnand %p1272_p6, %p1269_p5 }
 0x487   :  { %1277 = shalt.err (!%p1274_p7)
}
 0x488   :  { %s1288_s3 = smov 128   ;;  %s1289_s16 = smov 8  }
 0x489   :  { %1100 = dma.vmem_to_hbm [thread:$0]  %s1095_s28, 256, %s1730_s11, [#allocation3], %s1288_s3, %s1288_s3, %s1289_s16  }
 0x48a   :  { %1278 = dma.done.wait [#allocation3], 256  }
 0x48b   :  { %1279 = vsyncadd [#allocation3], 4294967040 }
 0x48c   :  { %1104 = vsyncpa [#allocation3], 1 }

</bundles_post_ra>
